<compile_context>
chip_gen: v7x
topology: tpu7x:2x2x1
jax: 0.10.0
libtpu: 0.0.40
codegen_flags: <defaults>
</compile_context>

<pallas_src>
import functools
import math

import jax
import jax.numpy as jnp
import numpy as np
from jax import lax
from jax.experimental import pallas as pl
from jax.experimental.pallas import tpu as pltpu

# log of the float32-rounded 1.05 (what the in-kernel f32 math actually sees).
_LOG_1P05 = float(np.log(np.float64(np.float32(1.05))))

_BLOCK_BYTES_TARGET = 2 << 20    # ~2 MiB per input block (fits v5e scoped VMEM)
_MAX_TM = 8192                   # sanity cap on the row tile


def _cdiv(a, b):
    return -(-a // b)


def _round_up(a, m):
    return _cdiv(a, m) * m


def _num_reduction_splits():
    """2 reduction splits on 2-TensorCore chips (v7x), else 1 (v5e/v6e)."""
    try:
        kind = jax.devices()[0].device_kind.lower()
    except Exception:
        return 1
    return 2 if ("v7" in kind or "tpu7" in kind) else 1


def _wbce_kernel(a_ref, b_ref, o_ref, t_ref, sum_ref, acc_ref, *,
                 tiles_per_split, total_elems, binary_targets):
    """One (TM, L) lane-packed tile of the weighted-BCE sum.

    a_ref, b_ref : (1, L)   folded class weights a=(1-w)^2, b=w*(1-w); lane l
                            carries class (l % C), broadcast over rows.
    o_ref, t_ref : (TM, L)  packed model outputs / targets tile (VMEM).
    sum_ref      : (1, 1)   SMEM partial sum for this reduction split.
    acc_ref      : (TM, L)  f32 VMEM accumulator (elementwise; reduced once).
    """
    p = pl.program_id(0)                 # reduction split (a TensorCore on v7x)
    i = pl.program_id(1)                 # tile within the split

    o = o_ref[...].astype(jnp.float32)
    t = t_ref[...].astype(jnp.float32)
    a = a_ref[...]
    b = b_ref[...]

    if binary_targets:
        # One log per element; exact only for hard {0, 1} targets.
        pos = t > 0.5
        arg = jnp.where(pos, o + 0.05, 1.05 - o)
        contrib = jnp.where(pos, a, b) * (_LOG_1P05 - jnp.log(arg))
    else:
        # -log((o+0.05)/1.05) = log(1.05) - log(o+0.05)  (no divides; EUP logs)
        a_lp = a * (_LOG_1P05 - jnp.log(o + 0.05))
        b_ln = b * (_LOG_1P05 - jnp.log(1.05 - o))
        contrib = t * (a_lp - b_ln) + b_ln

    @pl.when(i == 0)
    def _():
        acc_ref[...] = jnp.zeros_like(acc_ref)

    tm, lane = o.shape
    row0 = (p * tiles_per_split + i) * tm
    # Tiles whose flat range sticks past the real data (ragged last tile, row
    # over-run of the copy-free path, or an empty v7x split) are masked by
    # global flat element index; all interior tiles accumulate unmasked.
    needs_mask = (row0 + tm) * lane > total_elems

    @pl.when(needs_mask)
    def _():
        r = lax.broadcasted_iota(jnp.int32, (tm, lane), 0)
        l = lax.broadcasted_iota(jnp.int32, (tm, lane), 1)
        valid = (row0 + r) * lane + l < total_elems
        acc_ref[...] += jnp.where(valid, contrib, 0.0)

    @pl.when(jnp.logical_not(needs_mask))
    def _():
        acc_ref[...] += contrib

    @pl.when(i == pl.num_programs(1) - 1)
    def _():
        sum_ref[0, 0] = jnp.sum(acc_ref[...])


@functools.partial(jax.jit, static_argnames=("size_average", "binary_targets"))
def weighted_bce_loss(outputs, targets, weights, lambda_clf=1.0,
                      size_average=True, binary_targets=False):
    """Pallas TPU implementation of WeightedBCELoss.forward.

    outputs, targets: any shape (..., C); flattened to (N, C).
    weights: (C,) per-class weights.  Returns a float32 scalar.
    `binary_targets=True` enables a cheaper single-log path that is exact only
    for hard {0,1} labels (default keeps the soft-label-exact math).
    """
    num_class = outputs.shape[-1]
    n_rows = 1
    for d in outputs.shape[:-1]:
        n_rows *= d
    total = n_rows * num_class

    # ---- lane-dense packing: last dim L = lcm(128, C) ------------------------
    lane = (128 * num_class) // math.gcd(128, num_class)

    item_o = jnp.dtype(outputs.dtype).itemsize
    item_t = jnp.dtype(targets.dtype).itemsize
    sublane = max(8, 32 // min(item_o, item_t))      # 8 f32 / 16 bf16 / 32 int8

    splits = _num_reduction_splits()
    rows = _cdiv(total, lane)
    rows_per_split = _cdiv(rows, splits)

    # ~2 MiB input blocks sized by the real itemsize, rounded to the dtype's
    # sublane packing, capped to the data so tiny inputs stay a single tile.
    tm = max(1, _BLOCK_BYTES_TARGET // (lane * max(item_o, item_t)))
    tm = _round_up(min(tm, _MAX_TM), sublane)
    tm = min(tm, _round_up(rows_per_split, sublane))
    tiles_per_split = _cdiv(rows_per_split, tm)

    out_flat = outputs.reshape(-1)
    tgt_flat = targets.reshape(-1)
    if total % lane == 0:
        # Free reshape (bitcast) -- no host-side copy.  The grid may over-run
        # the row axis; the over-run is masked exactly in-kernel.
        kernel_rows = rows
    else:
        # Fallback for awkward sizes: pad the flat stream to the grid footprint
        # (this materializes one copy).  Padded elements are masked exactly
        # in-kernel, so they contribute 0 rather than a few ulps each.
        kernel_rows = splits * tiles_per_split * tm
        pad = kernel_rows * lane - total
        out_flat = jnp.pad(out_flat, (0, pad))
        tgt_flat = jnp.pad(tgt_flat, (0, pad))
    out2d = out_flat.reshape(kernel_rows, lane)
    tgt2d = tgt_flat.reshape(kernel_rows, lane)

    # ---- fold the class weights once: a = (1-w)^2, b = w*(1-w), tiled --------
    w = jnp.asarray(weights, jnp.float32).reshape(-1)
    reps = lane // num_class
    a_row = jnp.tile((1.0 - w) * (1.0 - w), reps).reshape(1, lane)
    b_row = jnp.tile(w * (1.0 - w), reps).reshape(1, lane)

    kernel = functools.partial(
        _wbce_kernel, tiles_per_split=tiles_per_split, total_elems=total,
        binary_targets=bool(binary_targets))

    # Real 2-TensorCore sharding on v7x; plain sequential reduction elsewhere.
    dims = ((pltpu.CORE_PARALLEL, pltpu.ARBITRARY) if splits > 1
            else (pltpu.ARBITRARY, pltpu.ARBITRARY))

    partials = pl.pallas_call(
        kernel,
        out_shape=jax.ShapeDtypeStruct((splits, 1), jnp.float32),
        grid_spec=pltpu.PrefetchScalarGridSpec(
            num_scalar_prefetch=0,
            grid=(splits, tiles_per_split),
            in_specs=[
                pl.BlockSpec((1, lane), lambda p, i: (0, 0)),      # a weights
                pl.BlockSpec((1, lane), lambda p, i: (0, 0)),      # b weights
                pl.BlockSpec((tm, lane),
                             lambda p, i: (p * tiles_per_split + i, 0)),
                pl.BlockSpec((tm, lane),
                             lambda p, i: (p * tiles_per_split + i, 0)),
            ],
            out_specs=pl.BlockSpec((1, 1), lambda p, i: (p, 0),
                                   memory_space=pltpu.MemorySpace.SMEM),
            scratch_shapes=[pltpu.VMEM((tm, lane), jnp.float32)],
        ),
        compiler_params=pltpu.CompilerParams(dimension_semantics=dims),
    )(a_row, b_row, out2d, tgt2d)

    # NOTE: the PyTorch module ignores `size_average` in forward; we do too.
    return lambda_clf * jnp.sum(partials) / (num_class * n_rows)


def _reference(outputs, targets, weights, lambda_clf=1.0):
    """Pure-JAX reference mirroring the PyTorch loop exactly."""
    num_class = outputs.shape[-1]
    o = outputs.reshape(-1, num_class).astype(jnp.float32)
    t = targets.reshape(-1, num_class).astype(jnp.float32)
    n = o.shape[0]
    loss_buff = 0.0
    for i in range(num_class):
        w = weights[i]
        loss_au = jnp.sum(-((1.0 - w) * t[:, i] * jnp.log((o[:, i] + 0.05) / 1.05)
                            + w * (1.0 - t[:, i]) * jnp.log((1.05 - o[:, i]) / 1.05)))
        loss_buff += (1.0 - w) * loss_au
    return lambda_clf * loss_buff / (num_class * n)


if __name__ == "__main__":
    key = jax.random.PRNGKey(0)
    k1, k2, k3, k4 = jax.random.split(key, 4)

    weights = jnp.array([0.6, 0.3, 0.8, 0.5], dtype=jnp.float32)
    lambda_clf = 1.0

    # Case 1: (batch=2, seq=8, C=4) -> N=16, total=64 (< lane): exercises the
    # padded fallback path and the exact in-kernel tail masking.
    out1 = jax.random.uniform(k1, (2, 8, 4), dtype=jnp.float32,
                              minval=0.01, maxval=0.99)
    tgt1 = (jax.random.uniform(k2, (2, 8, 4)) > 0.5).astype(jnp.float32)
    loss1 = jax.block_until_ready(
        weighted_bce_loss(out1, tgt1, weights, lambda_clf=lambda_clf))
    ref1 = _reference(out1, tgt1, weights, lambda_clf=lambda_clf)
    assert jnp.allclose(loss1, ref1, rtol=2e-5, atol=2e-6), (loss1, ref1)

    # Case 2: (batch=16, seq=32, C=4) -> total=2048 = 16*lane: exercises the
    # copy-free fast path (no jnp.pad, free reshape to (16, 128)).
    out2 = jax.random.uniform(k3, (16, 32, 4), dtype=jnp.float32,
                              minval=0.01, maxval=0.99)
    tgt2 = (jax.random.uniform(k4, (16, 32, 4)) > 0.5).astype(jnp.float32)
    loss2 = jax.block_until_ready(
        weighted_bce_loss(out2, tgt2, weights, lambda_clf=lambda_clf))
    ref2 = _reference(out2, tgt2, weights, lambda_clf=lambda_clf)
    assert jnp.allclose(loss2, ref2, rtol=2e-5, atol=2e-6), (loss2, ref2)

    print("KERNEL_OK")
</pallas_src>

<mosaic_0001>
module attributes {stable_mosaic.version = 11 : i64} {
  func.func @_wbce_kernel(%arg0: i32, %arg1: i32, %arg2: memref<1x128xf32, #tpu.memory_space<vmem>>, %arg3: memref<1x128xf32, #tpu.memory_space<vmem>>, %arg4: memref<8x128xf32, #tpu.memory_space<vmem>>, %arg5: memref<8x128xf32, #tpu.memory_space<vmem>>, %arg6: memref<1x1xf32, #tpu.memory_space<smem>>, %arg7: memref<8x128xf32, #tpu.memory_space<vmem>>) attributes {dimension_semantics = [#tpu.dimension_semantics<arbitrary>, #tpu.dimension_semantics<arbitrary>], iteration_bounds = array<i64: 1, 1>, scalar_prefetch = 0 : i64, scratch_operands = 1 : i64, tpu.core_type = #tpu.core_type<tc>, window_params = [{pipeline_mode = #tpu.pipeline_mode<synchronous>, transform_indices = @transform_0, window_bounds = array<i64: 1, 128>}, {pipeline_mode = #tpu.pipeline_mode<synchronous>, transform_indices = @transform_1, window_bounds = array<i64: 1, 128>}, {transform_indices = @transform_2, window_bounds = array<i64: 8, 128>}, {transform_indices = @transform_3, window_bounds = array<i64: 8, 128>}, {transform_indices = @transform_4, window_bounds = array<i64: 1, 1>}]} {
    %c0 = arith.constant 0 : index
    %c0_0 = arith.constant 0 : index
    %0 = vector.load %arg4[%c0, %c0_0] : memref<8x128xf32, #tpu.memory_space<vmem>>, vector<8x128xf32>
    %c0_1 = arith.constant 0 : index
    %c0_2 = arith.constant 0 : index
    %1 = vector.load %arg5[%c0_1, %c0_2] : memref<8x128xf32, #tpu.memory_space<vmem>>, vector<8x128xf32>
    %c0_3 = arith.constant 0 : index
    %c0_4 = arith.constant 0 : index
    %2 = vector.load %arg2[%c0_3, %c0_4] : memref<1x128xf32, #tpu.memory_space<vmem>>, vector<1x128xf32>
    %c0_5 = arith.constant 0 : index
    %c0_6 = arith.constant 0 : index
    %3 = vector.load %arg3[%c0_5, %c0_6] : memref<1x128xf32, #tpu.memory_space<vmem>>, vector<1x128xf32>
    %cst = arith.constant 5.000000e-02 : f32
    %4 = vector.broadcast %cst : f32 to vector<8x128xf32>
    %5 = arith.addf %0, %4 : vector<8x128xf32>
    %6 = math.log %5 : vector<8x128xf32>
    %cst_7 = arith.constant 0.0487901196 : f32
    %7 = vector.broadcast %cst_7 : f32 to vector<8x128xf32>
    %8 = arith.subf %7, %6 : vector<8x128xf32>
    %9 = vector.broadcast %2 : vector<1x128xf32> to vector<8x128xf32>
    %10 = arith.mulf %9, %8 : vector<8x128xf32>
    %cst_8 = arith.constant 1.050000e+00 : f32
    %11 = vector.broadcast %cst_8 : f32 to vector<8x128xf32>
    %12 = arith.subf %11, %0 : vector<8x128xf32>
    %13 = math.log %12 : vector<8x128xf32>
    %cst_9 = arith.constant 0.0487901196 : f32
    %14 = vector.broadcast %cst_9 : f32 to vector<8x128xf32>
    %15 = arith.subf %14, %13 : vector<8x128xf32>
    %16 = vector.broadcast %3 : vector<1x128xf32> to vector<8x128xf32>
    %17 = arith.mulf %16, %15 : vector<8x128xf32>
    %18 = arith.subf %10, %17 : vector<8x128xf32>
    %19 = arith.mulf %1, %18 : vector<8x128xf32>
    %20 = arith.addf %19, %17 : vector<8x128xf32>
    %c0_i32 = arith.constant 0 : i32
    %21 = arith.cmpi eq, %arg1, %c0_i32 : i32
    %22 = arith.extui %21 : i1 to i32
    %c0_i32_10 = arith.constant 0 : i32
    %23 = arith.cmpi ne, %22, %c0_i32_10 : i32
    scf.if %23 {
      %cst_16 = arith.constant 0.000000e+00 : f32
      %38 = vector.broadcast %cst_16 : f32 to vector<8x128xf32>
      %c0_17 = arith.constant 0 : index
      %c0_18 = arith.constant 0 : index
      %39 = vector.load %arg7[%c0_17, %c0_18] : memref<8x128xf32, #tpu.memory_space<vmem>>, vector<8x128xf32>
      tpu.vector_store %arg7[%c0_17, %c0_18], %38 {strides = array<i32>} : memref<8x128xf32, #tpu.memory_space<vmem>>, vector<8x128xf32>,
    } else {
    }
    %c1_i32 = arith.constant 1 : i32
    %24 = arith.muli %arg0, %c1_i32 : i32
    %25 = arith.addi %24, %arg1 : i32
    %c8_i32 = arith.constant 8 : i32
    %26 = arith.muli %25, %c8_i32 : i32
    %c8_i32_11 = arith.constant 8 : i32
    %27 = arith.addi %26, %c8_i32_11 : i32
    %c128_i32 = arith.constant 128 : i32
    %28 = arith.muli %27, %c128_i32 : i32
    %c64_i32 = arith.constant 64 : i32
    %29 = arith.cmpi sgt, %28, %c64_i32 : i32
    %30 = arith.extui %29 : i1 to i32
    %c0_i32_12 = arith.constant 0 : i32
    %31 = arith.cmpi ne, %30, %c0_i32_12 : i32
    scf.if %31 {
      %38 = tpu.iota {dimensions = array<i32: 0>} : vector<8x128xi32>
      %39 = tpu.iota {dimensions = array<i32: 1>} : vector<8x128xi32>
      %40 = vector.broadcast %26 : i32 to vector<8x128xi32>
      %41 = arith.addi %40, %38 : vector<8x128xi32>
      %c128_i32_16 = arith.constant 128 : i32
      %42 = vector.broadcast %c128_i32_16 : i32 to vector<8x128xi32>
      %43 = arith.muli %41, %42 : vector<8x128xi32>
      %44 = arith.addi %43, %39 : vector<8x128xi32>
      %c64_i32_17 = arith.constant 64 : i32
      %45 = vector.broadcast %c64_i32_17 : i32 to vector<8x128xi32>
      %46 = arith.cmpi slt, %44, %45 : vector<8x128xi32>
      %c0_18 = arith.constant 0 : index
      %c0_19 = arith.constant 0 : index
      %47 = vector.load %arg7[%c0_18, %c0_19] : memref<8x128xf32, #tpu.memory_space<vmem>>, vector<8x128xf32>
      %cst_20 = arith.constant 0.000000e+00 : f32
      %48 = vector.broadcast %cst_20 : f32 to vector<8x128xf32>
      %49 = arith.select %46, %20, %48 : vector<8x128xi1>, vector<8x128xf32>
      %50 = arith.addf %47, %49 : vector<8x128xf32>
      %c0_21 = arith.constant 0 : index
      %c0_22 = arith.constant 0 : index
      %51 = vector.load %arg7[%c0_21, %c0_22] : memref<8x128xf32, #tpu.memory_space<vmem>>, vector<8x128xf32>
      tpu.vector_store %arg7[%c0_21, %c0_22], %50 {strides = array<i32>} : memref<8x128xf32, #tpu.memory_space<vmem>>, vector<8x128xf32>,
    } else {
    }
    %true = arith.constant true
    %32 = arith.xori %29, %true : i1
    %33 = arith.extui %32 : i1 to i32
    %c0_i32_13 = arith.constant 0 : i32
    %34 = arith.cmpi ne, %33, %c0_i32_13 : i32
    scf.if %34 {
      %c0_16 = arith.constant 0 : index
      %c0_17 = arith.constant 0 : index
      %38 = vector.load %arg7[%c0_16, %c0_17] : memref<8x128xf32, #tpu.memory_space<vmem>>, vector<8x128xf32>
      %39 = arith.addf %38, %20 : vector<8x128xf32>
      %c0_18 = arith.constant 0 : index
      %c0_19 = arith.constant 0 : index
      %40 = vector.load %arg7[%c0_18, %c0_19] : memref<8x128xf32, #tpu.memory_space<vmem>>, vector<8x128xf32>
      tpu.vector_store %arg7[%c0_18, %c0_19], %39 {strides = array<i32>} : memref<8x128xf32, #tpu.memory_space<vmem>>, vector<8x128xf32>,
    } else {
    }
    %c0_i32_14 = arith.constant 0 : i32
    %35 = arith.cmpi eq, %arg1, %c0_i32_14 : i32
    %36 = arith.extui %35 : i1 to i32
    %c0_i32_15 = arith.constant 0 : i32
    %37 = arith.cmpi ne, %36, %c0_i32_15 : i32
    scf.if %37 {
      %c0_16 = arith.constant 0 : index
      %c0_17 = arith.constant 0 : index
      %38 = vector.load %arg7[%c0_16, %c0_17] : memref<8x128xf32, #tpu.memory_space<vmem>>, vector<8x128xf32>
      %39 = vector.shape_cast %38 : vector<8x128xf32> to vector<1x8x128xf32>
      %cst_18 = arith.constant dense<0.000000e+00> : vector<1xf32>
      %40 = vector.multi_reduction <add>, %39, %cst_18 [1, 2] : vector<1x8x128xf32> to vector<1xf32>
      %41 = vector.shape_cast %40 : vector<1xf32> to vector<1x1x1xf32>
      %42 = vector.extract %41[0, 0, 0] : f32 from vector<1x1x1xf32>
      %c0_19 = arith.constant 0 : index
      %c0_20 = arith.constant 0 : index
      %43 = memref.load %arg6[%c0_19, %c0_20] : memref<1x1xf32, #tpu.memory_space<smem>>
      memref.store %42, %arg6[%c0_19, %c0_20] : memref<1x1xf32, #tpu.memory_space<smem>>
    } else {
    }
    return
  }
  func.func @transform_0(%arg0: i32, %arg1: i32) -> (i32, i32) {
    %c0_i32 = arith.constant 0 : i32
    %c0_i32_0 = arith.constant 0 : i32
    %c0_i32_1 = arith.constant 0 : i32
    return %c0_i32, %c0_i32_0 : i32, i32
  }
  func.func @transform_1(%arg0: i32, %arg1: i32) -> (i32, i32) {
    %c0_i32 = arith.constant 0 : i32
    %c0_i32_0 = arith.constant 0 : i32
    %c0_i32_1 = arith.constant 0 : i32
    return %c0_i32, %c0_i32_0 : i32, i32
  }
  func.func @transform_2(%arg0: i32, %arg1: i32) -> (i32, i32) {
    %c1_i32 = arith.constant 1 : i32
    %0 = arith.muli %arg0, %c1_i32 : i32
    %1 = arith.addi %0, %arg1 : i32
    %c0_i32 = arith.constant 0 : i32
    %c0_i32_0 = arith.constant 0 : i32
    return %1, %c0_i32 : i32, i32
  }
  func.func @transform_3(%arg0: i32, %arg1: i32) -> (i32, i32) {
    %c1_i32 = arith.constant 1 : i32
    %0 = arith.muli %arg0, %c1_i32 : i32
    %1 = arith.addi %0, %arg1 : i32
    %c0_i32 = arith.constant 0 : i32
    %c0_i32_0 = arith.constant 0 : i32
    return %1, %c0_i32 : i32, i32
  }
  func.func @transform_4(%arg0: i32, %arg1: i32) -> (i32, i32) {
    %c0_i32 = arith.constant 0 : i32
    %c0_i32_0 = arith.constant 0 : i32
    return %arg0, %c0_i32 : i32, i32
  }
}

</mosaic_0001>

<bundles_post_ra>
// kernel: tile.13
= control target key start
LH: loop header
LB: loop body
LE: loop exit
PB: predicated region body
PF: predicated region fallthrough
CT: control target
= control target key end

     0   :  { %s40_s0 = inlined_call_operand.vmem [shape: f32[4], index: 0, kind: input, shape index: {}]   ;;  %s41_s1 = inlined_call_operand.vmem [shape: f32[32,4], index: 1, kind: output, shape index: {}]  }
   0x1   :  { %v4_v0 = vld [vmem:[%s40_s0] ss:$0 sm:$0xff] }
   0x2   :  { %5 = vst [vmem:[%s41_s1] sm:$0xff] %v4_v0  ;;  %12 = vst [vmem:[%s41_s1 + $0x8] sm:$0xff] %v4_v0 }
   0x3   :  { %13 = vst [vmem:[%s41_s1 + $0x10] sm:$0xff] %v4_v0  ;;  %14 = vst [vmem:[%s41_s1 + $0x18] sm:$0xff] %v4_v0 }

// kernel: tile.14
= control target key start
LH: loop header
LB: loop body
LE: loop exit
PB: predicated region body
PF: predicated region fallthrough
CT: control target
= control target key end

     0   :  { %s259_s10 = smov 124   ;;  %s260_s11 = smov 116   ;;  %vm3_vm0 = vcmask 31744   ;;  %vm9_vm1 = vcmask 1048544   ;;  %vm15_vm2 = vcmask 1015744   ;;  %vm21_vm3 = vcmask 982944   ;;  %s399_s0 = inlined_call_operand.vmem [shape: f32[32,4], index: 0, kind: input, shape index: {}]   ;;  %s400_s1 = inlined_call_operand.vmem [shape: f32[1,128], index: 1, kind: output, shape index: {}]  }
   0x1   :  { %v197_v0 = vld [vmem:[%s399_s0 + $0x1f] sm:$0x1]   ;;  %v199_v1 = vld [vmem:[%s399_s0 + $0x1d] sm:$0x1]   ;;  %v198_v2 = vld [vmem:[%s399_s0 + $0x1e] sm:$0x1]  }
   0x2   :  { %7 = vrot.lane.b32.xlu0 %v197_v0, %s259_s10  ;;  %19 = vrot.lane.b32.xlu1 %v199_v1, %s260_s11  ;;  %v200_v3 = vld [vmem:[%s399_s0 + $0x1c] sm:$0x1]   ;;  %s261_s16 = smov 120   ;;  %s262_s17 = smov 112   ;;  %v201_v4 = vld [vmem:[%s399_s0 + $0x1b] sm:$0x1]  }
   0x3   :  { %v202_v5 = vld [vmem:[%s399_s0 + $0x1a] sm:$0x1]   ;;  %s263_s22 = smov 108   ;;  %s264_s23 = smov 104   ;;  %v203_v6 = vld [vmem:[%s399_s0 + $0x19] sm:$0x1]  }
   0x4   :  { %v204_v7 = vld [vmem:[%s399_s0 + $0x18] sm:$0x1]   ;;  %s265_s28 = smov 100   ;;  %s266_s29 = smov 96   ;;  %v205_v8 = vld [vmem:[%s399_s0 + $0x17] sm:$0x1]  }
   0x5   :  { %v206_v9 = vld [vmem:[%s399_s0 + $0x16] sm:$0x1]   ;;  %v2_v10 = vld [vmem:[%s399_s0] sm:$0x1]   ;;  %s267_s7 = smov 92   ;;  %s268_s8 = smov 88  }
   0x6   :  { %13 = vrot.lane.b32.xlu0 %v198_v2, %s261_s16  ;;  %25 = vrot.lane.b32.xlu1 %v200_v3, %s262_s17  ;;  %4 = vst.msk [vmem:[#allocation0] sm:$0x1] %vm3_vm0, %v2_v10   ;;  %v207_v11 = vld [vmem:[%s399_s0 + $0x15] sm:$0x1]   ;;  %v208_v12 = vld [vmem:[%s399_s0 + $0x14] sm:$0x1]  }
   0x7   :  { %s269_s13 = smov 84   ;;  %s270_s14 = smov 80   ;;  %v209_v13 = vld [vmem:[%s399_s0 + $0x13] sm:$0x1]   ;;  %v210_v14 = vld [vmem:[%s399_s0 + $0x12] sm:$0x1]  }
   0x8   :  { %s271_s19 = smov 76   ;;  %s272_s20 = smov 72   ;;  %v211_v15 = vld [vmem:[%s399_s0 + $0x11] sm:$0x1]   ;;  %v212_v16 = vld [vmem:[%s399_s0 + $0x10] sm:$0x1]  }
   0x9   :  { %s273_s25 = smov 68   ;;  %s274_s26 = smov 64   ;;  %v213_v17 = vld [vmem:[%s399_s0 + $0xf] sm:$0x1]   ;;  %v214_v18 = vld [vmem:[%s399_s0 + $0xe] sm:$0x1]  }
   0xa   :  { %31 = vrot.lane.b32.xlu0 %v201_v4, %s263_s22  ;;  %37 = vrot.lane.b32.xlu1 %v202_v5, %s264_s23  ;;  %s275_s2 = smov 60   ;;  %s276_s3 = smov 56   ;;  %v215_v19 = vld [vmem:[%s399_s0 + $0xd] sm:$0x1]   ;;  %v216_v20 = vld [vmem:[%s399_s0 + $0xc] sm:$0x1]  }
   0xb   :  { %s278_s9 = smov 48   ;;  %v217_v21 = vld [vmem:[%s399_s0 + $0xb] sm:$0x1]   ;;  %v218_v22 = vld [vmem:[%s399_s0 + $0xa] sm:$0x1]   ;;  %s280_s15 = smov 40  }
   0xc   :  { %v219_v23 = vld [vmem:[%s399_s0 + $0x9] sm:$0x1]   ;;  %v220_v24 = vld [vmem:[%s399_s0 + $0x8] sm:$0x1]   ;;  %s282_s21 = smov 32   ;;  %s284_s27 = smov 24  }
   0xd   :  { %v221_v25 = vld [vmem:[%s399_s0 + $0x7] sm:$0x1]   ;;  %v222_v26 = vld [vmem:[%s399_s0 + $0x6] sm:$0x1]   ;;  %v223_v27 = vld [vmem:[%s399_s0 + $0x5] sm:$0x1]  }
   0xe   :  { %43 = vrot.lane.b32.xlu0 %v203_v6, %s265_s28  ;;  %49 = vrot.lane.b32.xlu1 %v204_v7, %s266_s29  ;;  %v224_v28 = vld [vmem:[%s399_s0 + $0x4] sm:$0x1]   ;;  %s286_s4 = smov 16   ;;  %v225_v29 = vld [vmem:[%s399_s0 + $0x3] sm:$0x1]   ;;  %s288_s10 = smov 8  }
   0xf   :  { %v226_v30 = vld [vmem:[%s399_s0 + $0x2] sm:$0x1]   ;;  %v227_v31 = vld [vmem:[%s399_s0 + $0x1] sm:$0x1]   ;;  %s289_s0 = smov 4   ;;  %vm27_vm4 = vcmask 950144  }
  0x10   :  { %vm33_vm5 = vcmask 917344   ;;  %vm39_vm6 = vcmask 884544   ;;  %vm45_vm7 = vcmask 851744   ;;  %vm51_vm8 = vcmask 818944  }
  0x11   :  { %vm57_vm9 = vcmask 786144   ;;  %vm63_vm10 = vcmask 753344   ;;  %vm69_vm11 = vcmask 720544   ;;  %vm75_vm12 = vcmask 687744  }
  0x12   :  { %55 = vrot.lane.b32.xlu0 %v205_v8, %s267_s7  ;;  %61 = vrot.lane.b32.xlu1 %v206_v9, %s268_s8  ;;  %s277_s8 = smov 52   ;;  %vm81_vm13 = vcmask 654944   ;;  %vm87_vm14 = vcmask 622144   ;;  %vm93_vm15 = vcmask 589344   ;;  %vm99_vm0 = vcmask 556544  }
  0x16   :  { %67 = vrot.lane.b32.xlu0 %v207_v11, %s269_s13  ;;  %73 = vrot.lane.b32.xlu1 %v208_v12, %s270_s14  ;;  %s279_s14 = smov 44  }
  0x1a   :  { %79 = vrot.lane.b32.xlu0 %v209_v13, %s271_s19  ;;  %85 = vrot.lane.b32.xlu1 %v210_v14, %s272_s20  ;;  %s281_s20 = smov 36  }
  0x1e   :  { %91 = vrot.lane.b32.xlu0 %v211_v15, %s273_s25  ;;  %97 = vrot.lane.b32.xlu1 %v212_v16, %s274_s26  ;;  %s283_s26 = smov 28  }
  0x22   :  { %103 = vrot.lane.b32.xlu0 %v213_v17, %s275_s2  ;;  %109 = vrot.lane.b32.xlu1 %v214_v18, %s276_s3  ;;  %s285_s3 = smov 20  }
  0x26   :  { %115 = vrot.lane.b32.xlu0 %v215_v19, %s277_s8  ;;  %121 = vrot.lane.b32.xlu1 %v216_v20, %s278_s9  ;;  %s287_s9 = smov 12  }
  0x2a   :  { %127 = vrot.lane.b32.xlu0 %v217_v21, %s279_s14  ;;  %133 = vrot.lane.b32.xlu1 %v218_v22, %s280_s15 }
  0x2e   :  { %139 = vrot.lane.b32.xlu0 %v219_v23, %s281_s20  ;;  %145 = vrot.lane.b32.xlu1 %v220_v24, %s282_s21 }
  0x32   :  { %151 = vrot.lane.b32.xlu0 %v221_v25, %s283_s26  ;;  %157 = vrot.lane.b32.xlu1 %v222_v26, %s284_s27 }
  0x36   :  { %163 = vrot.lane.b32.xlu0 %v223_v27, %s285_s3  ;;  %169 = vrot.lane.b32.xlu1 %v224_v28, %s286_s4 }
  0x3a   :  { %175 = vrot.lane.b32.xlu0 %v225_v29, %s287_s9  ;;  %181 = vrot.lane.b32.xlu1 %v226_v30, %s288_s10 }
  0x3e   :  { %187 = vrot.lane.b32.xlu0 %v227_v31, %s289_s0 }
  0x74   :  { %v8_v32 = vpop.permute.xlu0 %7   ;;  %v20_v33 = vpop.permute.xlu1 %19  }
  0x75   :  { %10 = vst.msk [vmem:[#allocation0] sm:$0x1] %vm9_vm1, %v8_v32   ;;  %vm105_vm1 = vcmask 523744  }
  0x78   :  { %v14_v34 = vpop.permute.xlu0 %13   ;;  %v26_v35 = vpop.permute.xlu1 %25  }
  0x79   :  { %16 = vst.msk [vmem:[#allocation0] sm:$0x1] %vm15_vm2, %v14_v34   ;;  %vm111_vm2 = vcmask 490944  }
  0x7a   :  { %22 = vst.msk [vmem:[#allocation0] sm:$0x1] %vm21_vm3, %v20_v33   ;;  %vm117_vm3 = vcmask 458144  }
  0x7b   :  { %28 = vst.msk [vmem:[#allocation0] sm:$0x1] %vm27_vm4, %v26_v35   ;;  %vm123_vm4 = vcmask 425344  }
  0x7c   :  { %v32_v36 = vpop.permute.xlu0 %31   ;;  %v38_v37 = vpop.permute.xlu1 %37  }
  0x7d   :  { %34 = vst.msk [vmem:[#allocation0] sm:$0x1] %vm33_vm5, %v32_v36   ;;  %vm129_vm5 = vcmask 392544  }
  0x7e   :  { %40 = vst.msk [vmem:[#allocation0] sm:$0x1] %vm39_vm6, %v38_v37   ;;  %vm135_vm6 = vcmask 359744  }
  0x80   :  { %v44_v38 = vpop.permute.xlu0 %43   ;;  %v50_v39 = vpop.permute.xlu1 %49  }
  0x81   :  { %46 = vst.msk [vmem:[#allocation0] sm:$0x1] %vm45_vm7, %v44_v38   ;;  %vm141_vm7 = vcmask 326944  }
  0x82   :  { %52 = vst.msk [vmem:[#allocation0] sm:$0x1] %vm51_vm8, %v50_v39   ;;  %vm147_vm8 = vcmask 294144  }
  0x84   :  { %v56_v40 = vpop.permute.xlu0 %55   ;;  %v62_v41 = vpop.permute.xlu1 %61  }
  0x85   :  { %58 = vst.msk [vmem:[#allocation0] sm:$0x1] %vm57_vm9, %v56_v40   ;;  %vm153_vm9 = vcmask 261344  }
  0x86   :  { %64 = vst.msk [vmem:[#allocation0] sm:$0x1] %vm63_vm10, %v62_v41   ;;  %vm159_vm10 = vcmask 228544  }
  0x88   :  { %v68_v42 = vpop.permute.xlu0 %67   ;;  %v74_v43 = vpop.permute.xlu1 %73  }
  0x89   :  { %70 = vst.msk [vmem:[#allocation0] sm:$0x1] %vm69_vm11, %v68_v42   ;;  %vm165_vm11 = vcmask 195744  }
  0x8a   :  { %76 = vst.msk [vmem:[#allocation0] sm:$0x1] %vm75_vm12, %v74_v43   ;;  %vm171_vm12 = vcmask 162944  }
  0x8c   :  { %v80_v44 = vpop.permute.xlu0 %79   ;;  %v86_v45 = vpop.permute.xlu1 %85  }
  0x8d   :  { %82 = vst.msk [vmem:[#allocation0] sm:$0x1] %vm81_vm13, %v80_v44   ;;  %vm177_vm13 = vcmask 130144  }
  0x8e   :  { %88 = vst.msk [vmem:[#allocation0] sm:$0x1] %vm87_vm14, %v86_v45   ;;  %vm183_vm14 = vcmask 97344  }
  0x90   :  { %v92_v46 = vpop.permute.xlu0 %91   ;;  %v98_v47 = vpop.permute.xlu1 %97  }
  0x91   :  { %94 = vst.msk [vmem:[#allocation0] sm:$0x1] %vm93_vm15, %v92_v46   ;;  %vm189_vm15 = vcmask 64544  }
  0x92   :  { %100 = vst.msk [vmem:[#allocation0] sm:$0x1] %vm99_vm0, %v98_v47  }
  0x94   :  { %v104_v48 = vpop.permute.xlu0 %103   ;;  %v110_v49 = vpop.permute.xlu1 %109  }
  0x95   :  { %106 = vst.msk [vmem:[#allocation0] sm:$0x1] %vm105_vm1, %v104_v48  }
  0x96   :  { %112 = vst.msk [vmem:[#allocation0] sm:$0x1] %vm111_vm2, %v110_v49  }
  0x98   :  { %v116_v50 = vpop.permute.xlu0 %115   ;;  %v122_v51 = vpop.permute.xlu1 %121  }
  0x99   :  { %118 = vst.msk [vmem:[#allocation0] sm:$0x1] %vm117_vm3, %v116_v50  }
  0x9a   :  { %124 = vst.msk [vmem:[#allocation0] sm:$0x1] %vm123_vm4, %v122_v51  }
  0x9c   :  { %v128_v52 = vpop.permute.xlu0 %127   ;;  %v134_v53 = vpop.permute.xlu1 %133  }
  0x9d   :  { %130 = vst.msk [vmem:[#allocation0] sm:$0x1] %vm129_vm5, %v128_v52  }
  0x9e   :  { %136 = vst.msk [vmem:[#allocation0] sm:$0x1] %vm135_vm6, %v134_v53  }
  0xa0   :  { %v140_v54 = vpop.permute.xlu0 %139   ;;  %v146_v55 = vpop.permute.xlu1 %145  }
  0xa1   :  { %142 = vst.msk [vmem:[#allocation0] sm:$0x1] %vm141_vm7, %v140_v54  }
  0xa2   :  { %148 = vst.msk [vmem:[#allocation0] sm:$0x1] %vm147_vm8, %v146_v55  }
  0xa4   :  { %v152_v56 = vpop.permute.xlu0 %151   ;;  %v158_v57 = vpop.permute.xlu1 %157  }
  0xa5   :  { %154 = vst.msk [vmem:[#allocation0] sm:$0x1] %vm153_vm9, %v152_v56  }
  0xa6   :  { %160 = vst.msk [vmem:[#allocation0] sm:$0x1] %vm159_vm10, %v158_v57  }
  0xa8   :  { %v164_v58 = vpop.permute.xlu0 %163   ;;  %v170_v59 = vpop.permute.xlu1 %169  }
  0xa9   :  { %166 = vst.msk [vmem:[#allocation0] sm:$0x1] %vm165_vm11, %v164_v58  }
  0xaa   :  { %172 = vst.msk [vmem:[#allocation0] sm:$0x1] %vm171_vm12, %v170_v59  }
  0xac   :  { %v176_v60 = vpop.permute.xlu0 %175   ;;  %v182_v61 = vpop.permute.xlu1 %181  }
  0xad   :  { %178 = vst.msk [vmem:[#allocation0] sm:$0x1] %vm177_vm13, %v176_v60  }
  0xae   :  { %184 = vst.msk [vmem:[#allocation0] sm:$0x1] %vm183_vm14, %v182_v61  }
  0xb0   :  { %v188_v62 = vpop.permute.xlu0 %187  }
  0xb1   :  { %190 = vst.msk [vmem:[#allocation0] sm:$0x1] %vm189_vm15, %v188_v62  }
  0xb8   :  { %v194_v63 = vld [vmem:[#allocation0] sm:$0x1] }
  0xb9   :  { %196 = vst [vmem:[%s400_s1] sm:$0x1] %v194_v63 }

// kernel: weighted_bce_loss.1
= control target key start
LH: loop header
LB: loop body
LE: loop exit
PB: predicated region body
PF: predicated region fallthrough
CT: control target
= control target key end

     0   :  { %s225_s0 = inlined_call_operand.vmem [shape: f32[1,128], index: 0, kind: input, shape index: {}]   ;;  %s226_s1 = inlined_call_operand.vmem [shape: f32[1,128], index: 1, kind: input, shape index: {}]   ;;  %s227_s2 = inlined_call_operand.vmem [shape: f32[8,128], index: 2, kind: input, shape index: {}]   ;;  %s228_s3 = inlined_call_operand.vmem [shape: f32[8,128], index: 3, kind: input, shape index: {}]   ;;  %s229_s4 = inlined_call_operand.hbm [shape: f32[1,1], index: 4, kind: output, shape index: {}]  }
   0x1   :  { %v52_v0 = vld [vmem:[%s227_s2] sm:$0xff] }
   0x2   :  { %v56_v1 = vadd.f32 0.05, %v52_v0  ;;  %v67_v2 = vsub.f32 1.05, %v52_v0 }
   0x3   :  { %9 = vsyncpa [#allocation4], 0  ;;  %v94_v3 = vlaneseq  ;;  %v154_v8 = vld [vmem:[%s225_s0] ss:$0 sm:$0xff] }
   0x4   :  { %159 = vlog2.f32 %v56_v1  ;;  %v155_v10 = vld [vmem:[%s226_s1] ss:$0 sm:$0xff] }
   0x5   :  { %161 = vlog2.f32 %v67_v2  ;;  %v95_v4 = vshrl.u32 %v94_v3, 7  ;;  %v97_v12 = vand.u32 127, %v94_v3  ;;  %v53_v17 = vld [vmem:[%s228_s3] sm:$0xff]  ;;  %s163_s3 = scalar_lea.hbm %s229_s4, 16 }
   0x6   :  { %p164_p0 = scmp.ne.s32.totalorder %s229_s4, %s163_s3  ;;  %p167_p1 = scmp.lt.u32.totalorder %s163_s3, %s229_s4 }
   0x7   :  { %v100_v13 = vmul.u32 128, %v95_v4 }
   0x8   :  { %p169_p2 = pnand %p167_p1, %p164_p0 }
   0x9   :  { %v101_v18 = vadd.s32 %v100_v13, %v97_v12 }
   0xb   :  { %vm102_vm0 = vcmp.lt.s32.totalorder %v101_v18, 64 }
   0xe   :  { %v160_v5 = vpop.eup %159 }
   0xf   :  { %v162_v6 = vpop.eup %161  ;;  %v58_v7 = vmul.f32 0.6931472, %v160_v5 }
  0x10   :  { %v69_v9 = vmul.f32 0.6931472, %v162_v6 }
  0x11   :  { %v59_v11 = vsub.f32 0.04879012, %v58_v7 }
  0x12   :  { %v70_v14 = vsub.f32 0.04879012, %v69_v9 }
  0x13   :  { %v66_v15 = vmul.f32 %v154_v8, %v59_v11 }
  0x14   :  { %v77_v16 = vmul.f32 %v155_v10, %v70_v14 }
  0x16   :  { %v78_v19 = vsub.f32 %v66_v15, %v77_v16 }
  0x18   :  { %v79_v20 = vmul.f32 %v78_v19, %v53_v17 }
  0x1a   :  { %v80_v21 = vadd.f32 %v79_v20, %v77_v16 }
  0x1c   :  { %v104_v22 = vsel %vm102_vm0, %v80_v21, 0.0 }
  0x1d   :  { %118 = vadd.xlane.f32.xlu0 %v104_v22 }
  0xaa   :  { %v119_v23 = vpop.xlane.xlu0 %118 }
  0xab   :  { %v120_v24 = vrot.slane %v119_v23, 4 }
  0xad   :  { %v121_v25 = vadd.f32 %v120_v24, %v119_v23 }
  0xaf   :  { %v122_v26 = vrot.slane %v121_v25, 2 }
  0xb1   :  { %v123_v27 = vadd.f32 %v122_v26, %v121_v25 }
  0xb3   :  { %v124_v28 = vrot.slane %v123_v27, 1 }
  0xb5   :  { %v125_v29 = vadd.f32 %v124_v28, %v123_v27 }
  0xb7   :  { %156 = vpush %v125_v29 }
  0xe8   :  { %s157_s0 = spop %156 }
  0xe9   :  { %128 = sst [smem:[#allocation3]] %s157_s0 }
  0xea   :  { %172 = shalt.err (!%p169_p2)
}
  0xeb   :  { %s175_s27 = smov [#allocation3]  }
  0xec   :  { %136 = dma.smem_to_hbm %s175_s27, 16, %s229_s4, [#allocation4]  }
  0xed   :  { %173 = dma.done.wait [#allocation4], 16  }
  0xee   :  { %174 = vsyncadd [#allocation4], 4294967280 }
  0xef   :  { %140 = sfence }
  0xf0   :  { %141 = vsyncpa [#allocation4], 1 }

</bundles_post_ra>
